<compile_context>
chip_gen: v7x
topology: tpu7x:2x2x1
jax: 0.10.0
libtpu: 0.0.40
codegen_flags: <defaults>
</compile_context>

<pallas_src>
import jax
import jax.numpy as jnp
from jax.experimental import pallas as pl
from jax.experimental.pallas import tpu as pltpu


def _round_up(a, m):
    return -(-a // m) * m


def _pointwise_conv_kernel(x_ref, w_ref, b_ref, o_ref):
    # x_ref: (1, C_in, tn) f32 | w_ref: (C7, C_in) bf16
    # b_ref: (C7, 1) f32       | o_ref: (1, C7, tn) bf16
    xb = x_ref[0].astype(jnp.bfloat16)                       # in-kernel cast (VPU)
    acc = jnp.dot(w_ref[...], xb, preferred_element_type=jnp.float32)
    o_ref[0] = (acc + b_ref[...]).astype(o_ref.dtype)        # f32 bias, bf16 store


def upconv_layer_batch_forward(x, weight, bias, upconv_top_index,
                               upconv_down_index, out_feats):
    """Equivalent of upconv_layer_batch.forward.

    x:                 (B, in_feats, N)        float32
    weight:            (7*out_feats, in_feats) float32 (Conv1d k=1 weight, squeezed)
    bias:              (7*out_feats,)          float32
    upconv_top_index:  (N,)                    int32 in [0, 7N)
    upconv_down_index: (2*(3N-6),)             int32 in [0, 7N)
    returns:           (B, out_feats, 4N - 6)  float32
    """
    B, in_feats, raw_nodes = x.shape
    c7 = weight.shape[0]
    assert c7 == 7 * out_feats
    new_nodes = 4 * raw_nodes - 6
    lanes = 128

    # ---- per-generation VMEM budget & node-tile size ------------------------
    try:
        vmem_cap = int(pltpu.get_tpu_info().vmem_capacity_bytes)
    except Exception:
        vmem_cap = 64 * 1024 * 1024            # v7x-safe fallback (64 MiB / TC)
    budget = vmem_cap // 2                     # ~32 MiB v7x, ~64 MiB v5e/v6e

    def footprint(tn):
        # double-buffered tiles, physical (lane/sublane padded) VMEM bytes
        return (2 * _round_up(in_feats, 8) * tn * 4                         # x f32
                + 2 * _round_up(c7, 16) * _round_up(in_feats, lanes) * 2    # W bf16
                + 2 * _round_up(c7, 8) * lanes * 4                          # bias f32
                + 2 * _round_up(c7, 16) * tn * 2)                           # out bf16

    tn_cap = 2048 if vmem_cap >= 100 * 1024 * 1024 else 1024
    tn = min(tn_cap, _round_up(raw_nodes, lanes))
    while tn > lanes and footprint(tn) > budget:
        tn -= lanes
    n_tiles = pl.cdiv(raw_nodes, tn)

    w_c = weight.astype(jnp.bfloat16)                     # tiny; cast in wrapper
    b2 = bias.astype(jnp.float32).reshape(c7, 1)

    flops = 2 * B * n_tiles * tn * c7 * in_feats
    bytes_accessed = (x.size * 4 + w_c.size * 2 + c7 * 4
                      + B * c7 * raw_nodes * 2)

    y = pl.pallas_call(
        _pointwise_conv_kernel,
        out_shape=jax.ShapeDtypeStruct((B, c7, raw_nodes), jnp.bfloat16),
        grid_spec=pltpu.PrefetchScalarGridSpec(
            num_scalar_prefetch=0,
            grid=(n_tiles, B),                            # node tiles lead (v7x 2-TC)
            in_specs=[
                pl.BlockSpec((1, in_feats, tn), lambda j, b: (b, 0, j)),   # x (f32)
                pl.BlockSpec((c7, in_feats), lambda j, b: (0, 0)),         # weight
                pl.BlockSpec((c7, 1), lambda j, b: (0, 0)),                # bias
            ],
            out_specs=pl.BlockSpec((1, c7, tn), lambda j, b: (b, 0, j)),
        ),
        compiler_params=pltpu.CompilerParams(
            dimension_semantics=("parallel", "parallel"),
            vmem_limit_bytes=int(budget)),
        cost_estimate=pl.CostEstimate(flops=flops,
                                      bytes_accessed=bytes_accessed,
                                      transcendentals=0),
    )(x, w_c, b2)

    # ---- glue: view (B, 7F, N) as (B, F, 7, N) -- free contiguous reshape ----
    # and gather with indices decomposed into (k = idx // N, n = idx % N); this
    # avoids materializing the slice+reshape copy of the conv output.
    # TODO(synk): for very large meshes, fuse this gather + pairwise mean into a
    # second PrefetchScalarGridSpec kernel (index tables in SMEM, y slab in VMEM)
    # instead of relying on XLA's minor-axis gather.
    y4 = y.reshape(B, out_feats, 7, raw_nodes)
    top_k = upconv_top_index // raw_nodes
    top_n = upconv_top_index % raw_nodes
    down_k = upconv_down_index // raw_nodes
    down_n = upconv_down_index % raw_nodes

    x1 = y4[:, :, top_k, top_n].astype(jnp.float32)            # (B, F, N)
    x2 = y4[:, :, down_k, down_n].astype(jnp.float32)          # (B, F, 2*(3N-6))
    x2m = jnp.mean(x2.reshape(B, out_feats, -1, 2), axis=3)
    out = jnp.concatenate([x1, x2m], axis=2)
    assert out.shape == (B, out_feats, new_nodes)
    return out


if __name__ == "__main__":
    key = jax.random.PRNGKey(0)
    k_x, k_w, k_b, k_t, k_d = jax.random.split(key, 5)

    # Small, shape-consistent example (icosahedron level-1: 42 vertices).
    B = 2
    in_feats = 8
    out_feats = 16
    raw_nodes = 42
    new_nodes = 4 * raw_nodes - 6          # 162
    c7 = 7 * out_feats

    x = jax.random.normal(k_x, (B, in_feats, raw_nodes), dtype=jnp.float32)

    # nn.Conv1d(in_feats, 7*out_feats, kernel_size=1) style parameters.
    bound = 1.0 / (in_feats ** 0.5)
    weight = jax.random.uniform(k_w, (c7, in_feats), jnp.float32, -bound, bound)
    bias = jax.random.uniform(k_b, (c7,), jnp.float32, -bound, bound)

    # Upconv index tables: valid indices into the flattened 7*raw_nodes axis.
    upconv_top_index = jax.random.randint(
        k_t, (raw_nodes,), 0, 7 * raw_nodes, dtype=jnp.int32)
    upconv_down_index = jax.random.randint(
        k_d, (2 * (new_nodes - raw_nodes),), 0, 7 * raw_nodes, dtype=jnp.int32)

    out = upconv_layer_batch_forward(
        x, weight, bias, upconv_top_index, upconv_down_index, out_feats)
    out = jax.block_until_ready(out)

    # Reference mirrors the kernel numerics: bf16-rounded operands, f32 matmul
    # accumulation + f32 bias, bf16 round on store, f32 gather/mean.  Tolerance
    # allows for one bf16 ulp of post-store rounding difference.
    w_r = weight.astype(jnp.bfloat16).astype(jnp.float32)
    x_r = x.astype(jnp.bfloat16).astype(jnp.float32)
    y_ref = jnp.einsum("oc,bcn->bon", w_r, x_r,
                       precision=jax.lax.Precision.HIGHEST) + bias[None, :, None]
    y_ref = y_ref.astype(jnp.bfloat16).astype(jnp.float32)
    y_ref = y_ref.reshape(B, out_feats, 7 * raw_nodes)
    x1_ref = y_ref[:, :, upconv_top_index]
    x2_ref = y_ref[:, :, upconv_down_index].reshape(B, out_feats, -1, 2)
    ref = jnp.concatenate([x1_ref, jnp.mean(x2_ref, axis=3)], axis=2)

    assert out.shape == (B, out_feats, new_nodes)
    err = float(jnp.max(jnp.abs(out - ref)))
    assert jnp.allclose(out, ref, atol=1e-2, rtol=1e-2), err

    print("KERNEL_OK")
</pallas_src>

<mosaic_0001>
module attributes {stable_mosaic.version = 11 : i64} {
  func.func @_pointwise_conv_kernel(%arg0: i32, %arg1: i32, %arg2: memref<1x8x128xf32, #tpu.memory_space<vmem>>, %arg3: memref<112x8xbf16, #tpu.memory_space<vmem>>, %arg4: memref<112x1xf32, #tpu.memory_space<vmem>>, %arg5: memref<1x112x128xbf16, #tpu.memory_space<vmem>>) attributes {dimension_semantics = [#tpu.dimension_semantics<parallel>, #tpu.dimension_semantics<parallel>], iteration_bounds = array<i64: 1, 2>, scalar_prefetch = 0 : i64, scratch_operands = 0 : i64, tpu.core_type = #tpu.core_type<tc>, window_params = [{transform_indices = @transform_0, window_bounds = array<i64: 1, 8, 128>}, {pipeline_mode = #tpu.pipeline_mode<synchronous>, transform_indices = @transform_1, window_bounds = array<i64: 112, 8>}, {pipeline_mode = #tpu.pipeline_mode<synchronous>, transform_indices = @transform_2, window_bounds = array<i64: 112, 1>}, {transform_indices = @transform_3, window_bounds = array<i64: 1, 112, 128>}]} {
    %c0 = arith.constant 0 : index
    %c0_0 = arith.constant 0 : index
    %c0_1 = arith.constant 0 : index
    %0 = vector.load %arg2[%c0, %c0_0, %c0_1] : memref<1x8x128xf32, #tpu.memory_space<vmem>>, vector<1x8x128xf32>
    %1 = vector.shape_cast %0 : vector<1x8x128xf32> to vector<8x128xf32>
    %2 = arith.truncf %1 : vector<8x128xf32> to vector<8x128xbf16>
    %c0_2 = arith.constant 0 : index
    %c0_3 = arith.constant 0 : index
    %3 = vector.load %arg3[%c0_2, %c0_3] : memref<112x8xbf16, #tpu.memory_space<vmem>>, vector<112x8xbf16>
    %cst = arith.constant dense<0.000000e+00> : vector<112x128xf32>
    %4 = tpu.matmul %3, %2, %cst {dimension_numbers = #tpu.dot_dimension_numbers<[1], [0], [0], [1], [0, 0, 1, 1], [], []>} : vector<112x8xbf16>, vector<8x128xbf16>, vector<112x128xf32> -> vector<112x128xf32>
    %c0_4 = arith.constant 0 : index
    %c0_5 = arith.constant 0 : index
    %5 = vector.load %arg4[%c0_4, %c0_5] : memref<112x1xf32, #tpu.memory_space<vmem>>, vector<112x1xf32>
    %6 = vector.broadcast %5 : vector<112x1xf32> to vector<112x128xf32>
    %7 = arith.addf %4, %6 : vector<112x128xf32>
    %8 = arith.truncf %7 : vector<112x128xf32> to vector<112x128xbf16>
    %c0_6 = arith.constant 0 : index
    %c0_7 = arith.constant 0 : index
    %c0_8 = arith.constant 0 : index
    %9 = vector.load %arg5[%c0_6, %c0_7, %c0_8] : memref<1x112x128xbf16, #tpu.memory_space<vmem>>, vector<1x112x128xbf16>
    %10 = vector.shape_cast %9 : vector<1x112x128xbf16> to vector<112x128xbf16>
    %11 = vector.shape_cast %8 : vector<112x128xbf16> to vector<1x112x128xbf16>
    tpu.vector_store %arg5[%c0_6, %c0_7, %c0_8], %11 {strides = array<i32>} : memref<1x112x128xbf16, #tpu.memory_space<vmem>>, vector<1x112x128xbf16>,
    return
  }
  func.func @transform_0(%arg0: i32, %arg1: i32) -> (i32, i32, i32) {
    %c0_i32 = arith.constant 0 : i32
    %c0_i32_0 = arith.constant 0 : i32
    return %arg1, %c0_i32, %arg0 : i32, i32, i32
  }
  func.func @transform_1(%arg0: i32, %arg1: i32) -> (i32, i32) {
    %c0_i32 = arith.constant 0 : i32
    %c0_i32_0 = arith.constant 0 : i32
    %c0_i32_1 = arith.constant 0 : i32
    return %c0_i32, %c0_i32_0 : i32, i32
  }
  func.func @transform_2(%arg0: i32, %arg1: i32) -> (i32, i32) {
    %c0_i32 = arith.constant 0 : i32
    %c0_i32_0 = arith.constant 0 : i32
    %c0_i32_1 = arith.constant 0 : i32
    return %c0_i32, %c0_i32_0 : i32, i32
  }
  func.func @transform_3(%arg0: i32, %arg1: i32) -> (i32, i32, i32) {
    %c0_i32 = arith.constant 0 : i32
    %c0_i32_0 = arith.constant 0 : i32
    return %arg1, %c0_i32, %arg0 : i32, i32, i32
  }
}

</mosaic_0001>

<bundles_post_ra>
// kernel: tpu_custom_call.1
= control target key start
LH: loop header
LB: loop body
LE: loop exit
PB: predicated region body
PF: predicated region fallthrough
CT: control target
= control target key end

     0   :  { %s816_s12 = smov 0   ;;  %s818_s13 = smov 0   ;;  %s939_s0 = inlined_call_operand.vmem [shape: f32[2,8,42], index: 0, kind: input, shape index: {}]   ;;  %s940_s1 = inlined_call_operand.vmem [shape: bf16[112,8], index: 1, kind: input, shape index: {}]   ;;  %s941_s2 = inlined_call_operand.vmem [shape: f32[112,1], index: 2, kind: input, shape index: {}]   ;;  %s942_s3 = inlined_call_operand.vmem [shape: bf16[2,112,42], index: 3, kind: output, shape index: {}]  }
   0x1   :  { %s820_s14 = smov 0  }
   0x2 LB: > { %s22_s15 = sadd.s32 1, %s787_s13  ;;  %p604_p0 = scmp.ge.s32.totalorder %s791_s14, 1  ;;  %s791_s14 = sphi %s820_s14, %s13_s14   ;;  %s787_s13 = sphi %s818_s13, %s944_s13   ;;  %s783_s12 = sphi %s816_s12, %s943_s12  }
   0x3   : > { %p23_p1 = scmp.ge.s32.totalorder %s22_s15, 2  ;;  %p155_p2 = scmp.lt.s32.totalorder %s791_s14, 3 }
   0x5   : > { %s946_s15 = smov (%p23_p1, %s22_s15), 0  ;;  %p156_p3 = pnand %p604_p0, %p155_p2 }
   0x6   : > { %p184_p4 = scmp.lt.s32.totalorder (!%p156_p3), %s783_s12, 1  ;;  %v793_v0 = vmov (!%p156_p3), 0.0   ;;  %vm794_vm0 = vmmov (!%p156_p3), 0   ;;  %v795_v1 = vmov (!%p156_p3), 0   ;;  %vm357_vm1 = vcmask (!%p156_p3), 1043456   ;;  %v218_v4 = vld [vmem:[%s941_s2 + $0x10] sm:$0xff] (!%p156_p3) }
   0x7   : > { %159 = sbr.rel (%p156_p3) target bundleno = 267 (0x10b), region = 32  ;;  %700 = vmatprep.subr.bf16.mxu0 (!%p156_p3), %v793_v0  ;;  %730 = vmatprep.subr.bf16.mxu1 (!%p156_p3), %v793_v0  ;;  %v216_v5 = vld [vmem:[%s941_s2] sm:$0xff] (!%p156_p3)  ;;  %vm335_vm2 = vcmask (!%p156_p3), 64512   ;;  %v219_v9 = vld [vmem:[%s941_s2 + $0x18] sm:$0xff] (!%p156_p3)  ;;  %v217_v10 = vld [vmem:[%s941_s2 + $0x8] sm:$0xff] (!%p156_p3) }
   0x8   : > { %702 = vmatprep.mubr.msk.bf16.mxu0 (!%p156_p3), %vm794_vm0, %v793_v0  ;;  %718 = vmatprep.mubr.msk.bf16.mxu1 (!%p156_p3), %vm794_vm0, %v793_v0  ;;  %v762_v7 = vld [vmem:[%s940_s1] sm:$0xff] (!%p156_p3)   ;;  %v221_v11 = vld [vmem:[%s941_s2 + $0x28] sm:$0xff] (!%p156_p3)  ;;  %v223_v15 = vld [vmem:[%s941_s2 + $0x38] sm:$0xff] (!%p156_p3) }
   0x9   : > { %761 = vset.pattern.permute.xlu1 (!%p156_p3), %v795_v1  ;;  %760 = vset.pattern.permute.xlu0 (!%p156_p3), %v795_v1  ;;  %v763_v8 = vld [vmem:[%s940_s1 + $0x20] sm:$0xff] (!%p156_p3)   ;;  %v764_v13 = vld [vmem:[%s940_s1 + $0x8] sm:$0xff] (!%p156_p3)   ;;  %v222_v16 = vld [vmem:[%s941_s2 + $0x30] sm:$0xff] (!%p156_p3) }
   0xa   : > { %242 = vperm.xlu1 (!%p156_p3), %761, %v218_v4   ;;  %232 = vperm.xlu0 (!%p156_p3), %760, %v216_v5   ;;  %v220_v12 = vld [vmem:[%s941_s2 + $0x20] sm:$0xff] (!%p156_p3)  ;;  %v765_v14 = vld [vmem:[%s940_s1 + $0x28] sm:$0xff] (!%p156_p3)   ;;  %v766_v19 = vld [vmem:[%s940_s1 + $0x10] sm:$0xff] (!%p156_p3)  }
   0xb   : > { %v225_v17 = vld [vmem:[%s941_s2 + $0x48] sm:$0xff] (!%p156_p3)  ;;  %v224_v18 = vld [vmem:[%s941_s2 + $0x40] sm:$0xff] (!%p156_p3)  ;;  %v767_v20 = vld [vmem:[%s940_s1 + $0x30] sm:$0xff] (!%p156_p3)  }
   0xc   : > { %v227_v21 = vld [vmem:[%s941_s2 + $0x58] sm:$0xff] (!%p156_p3)  ;;  %v226_v22 = vld [vmem:[%s941_s2 + $0x50] sm:$0xff] (!%p156_p3)  ;;  %v229_v23 = vld [vmem:[%s941_s2 + $0x68] sm:$0xff] (!%p156_p3) }
   0xd   : > { %v228_v24 = vld [vmem:[%s941_s2 + $0x60] sm:$0xff] (!%p156_p3)  ;;  %v768_v25 = vld [vmem:[%s940_s1 + $0x18] sm:$0xff] (!%p156_p3)  }
   0xe   : > { %s948_s12 = smov (!%p184_p4, %s783_s12), 1  ;;  %247 = vperm.xlu1 %761, %v219_v9   ;;  %237 = vperm.xlu0 %760, %v217_v10  }
   0xf   : > { %s605_s16 = sshll.u32 %s948_s12, 3 }
  0x10   : > { %s190_s19 = scalar_lea.vmem %s939_s0, %s605_s16  ;;  %s732_s16 = smul.u32 56, %s948_s12 }
  0x11   : > { %v200_v2 = vld [vmem:[%s190_s19] sm:$0xff] }
  0x12   : > { %v201_v3 = vpack.c.bf16 %v200_v2, %v200_v2  ;;  %257 = vperm.xlu1 %761, %v221_v11   ;;  %252 = vperm.xlu0 %760, %v220_v12   ;;  %s921_s19 = scalar_lea.vmem %s942_s3, %s732_s16 }
  0x14   : > { %v359_v6 = vsel %vm357_vm1, %v201_v3, 0 }
  0x15   : > { %701 = vmatpush3.bf16.msra.mxu0 %v359_v6  ;;  %731 = vmatpush3.bf16.msra.mxu1 %v359_v6 }
  0x16   : > { %267 = vperm.xlu1 %761, %v223_v15   ;;  %262 = vperm.xlu0 %760, %v222_v16  }
  0x18   : > { %703 = vmatmul.mubr.msk.bf16.vlgmr.msra.gmra.mrb[0].mxu0 %vm335_vm2, %v762_v7  ;;  %719 = vmatmul.mubr.msk.bf16.vlgmr.msra.gmra.mrb[0].mxu1 %vm335_vm2, %v763_v8 }
  0x19   : > { %706 = vmatprep.mubr.msk.bf16.mxu0 %vm794_vm0, %v793_v0  ;;  %722 = vmatprep.mubr.msk.bf16.mxu1 %vm794_vm0, %v793_v0 }
  0x1a   : > { %277 = vperm.xlu1 %761, %v225_v17   ;;  %272 = vperm.xlu0 %760, %v224_v18  }
  0x1e   : > { %287 = vperm.xlu1 %761, %v227_v21   ;;  %282 = vperm.xlu0 %760, %v226_v22  }
  0x20   : > { %707 = vmatmul.mubr.msk.bf16.gmra.mrb[4].mxu0 %vm335_vm2, %v764_v13  ;;  %723 = vmatmul.mubr.msk.bf16.gmra.mrb[4].mxu1 %vm335_vm2, %v765_v14 }
  0x21   : > { %710 = vmatprep.mubr.msk.bf16.mxu0 %vm794_vm0, %v793_v0  ;;  %726 = vmatprep.mubr.msk.bf16.mxu1 %vm794_vm0, %v793_v0 }
  0x22   : > { %297 = vperm.xlu1 %761, %v229_v23   ;;  %292 = vperm.xlu0 %760, %v228_v24  }
  0x28   : > { %711 = vmatmul.mubr.msk.bf16.gmra.mrb[8].mxu0 %vm335_vm2, %v766_v19  ;;  %727 = vmatmul.mubr.msk.bf16.gmra.mrb[8].mxu1 %vm335_vm2, %v767_v20 }
  0x29   : > { %714 = vmatprep.mubr.msk.bf16.mxu0 %vm794_vm0, %v793_v0 }
  0x30   : > { %715 = vmatmul.mubr.msk.bf16.gmra.mrb[12].mxu0 %vm335_vm2, %v768_v25 }
  0x89   : > { %v243_v26 = vpop.permute.xlu1 %242  ;;  %v233_v27 = vpop.permute.xlu0 %232 }
  0x8d   : > { %v248_v28 = vpop.permute.xlu1 %247  ;;  %v238_v29 = vpop.permute.xlu0 %237 }
  0x91   : > { %v258_v30 = vpop.permute.xlu1 %257  ;;  %v253_v31 = vpop.permute.xlu0 %252 }
  0x95   : > { %v268_v32 = vpop.permute.xlu1 %267  ;;  %v263_v33 = vpop.permute.xlu0 %262 }
  0x99   : > { %v278_v34 = vpop.permute.xlu1 %277  ;;  %v273_v35 = vpop.permute.xlu0 %272 }
  0x9d   : > { %v288_v50 = vpop.permute.xlu1 %287  ;;  %v283_v51 = vpop.permute.xlu0 %282 }
  0xa1   : > { %v298_v2 = vpop.permute.xlu1 %297  ;;  %v293_v3 = vpop.permute.xlu0 %292 }
  0xeb   : > { %v395_v36 = vpop.f32.mrb[0].mxu0  ;;  %v427_v37 = vpop.f32.mrb[0].mxu1 }
  0xec   : > { %v428_v38 = vadd.f32 %v427_v37, %v273_v35  ;;  %v704_v39 = vpop.f32.mrb[1].mxu0  ;;  %v720_v40 = vpop.f32.mrb[1].mxu1  ;;  %v396_v43 = vadd.f32 %v395_v36, %v233_v27 }
  0xed   : > { %v398_v41 = vpop.f32.mrb[2].mxu0  ;;  %v430_v42 = vpop.f32.mrb[2].mxu1 }
  0xee   : > { %v399_v44 = vadd.f32 %v398_v41, %v238_v29  ;;  %v431_v45 = vadd.f32 %v430_v42, %v278_v34  ;;  %v705_v46 = vpop.f32.mrb[3].mxu0  ;;  %v721_v47 = vpop.f32.mrb[3].mxu1 }
  0xf0   : > { %v654_v48 = vpack.c.bf16 %v399_v44, %v396_v43  ;;  %v674_v49 = vpack.c.bf16 %v431_v45, %v428_v38 }
  0xf2   : > { %655 = vst [vmem:[%s921_s19] sm:$0xff] %v654_v48   ;;  %689 = vst [vmem:[%s921_s19 + $0x20] sm:$0xff] %v674_v49  }
  0xf3   : > { %v403_v52 = vpop.f32.mrb[4].mxu0  ;;  %v435_v53 = vpop.f32.mrb[4].mxu1 }
  0xf4   : > { %v708_v54 = vpop.f32.mrb[5].mxu0  ;;  %v724_v55 = vpop.f32.mrb[5].mxu1  ;;  %v404_v58 = vadd.f32 %v403_v52, %v243_v26  ;;  %v436_v59 = vadd.f32 %v435_v53, %v283_v51 }
  0xf5   : > { %v406_v56 = vpop.f32.mrb[6].mxu0  ;;  %v438_v57 = vpop.f32.mrb[6].mxu1 }
  0xf6   : > { %v407_v60 = vadd.f32 %v406_v56, %v248_v28  ;;  %v439_v61 = vadd.f32 %v438_v57, %v288_v50  ;;  %v709_v62 = vpop.f32.mrb[7].mxu0  ;;  %v725_v63 = vpop.f32.mrb[7].mxu1 }
  0xf8   : > { %v659_v0 = vpack.c.bf16 %v407_v60, %v404_v58  ;;  %v679_v1 = vpack.c.bf16 %v439_v61, %v436_v59 }
  0xfa   : > { %686 = vst [vmem:[%s921_s19 + $0x8] sm:$0xff] %v659_v0   ;;  %690 = vst [vmem:[%s921_s19 + $0x28] sm:$0xff] %v679_v1  }
  0xfb   : > { %v411_v4 = vpop.f32.mrb[8].mxu0  ;;  %v443_v5 = vpop.f32.mrb[8].mxu1 }
  0xfc   : > { %v712_v6 = vpop.f32.mrb[9].mxu0  ;;  %v728_v7 = vpop.f32.mrb[9].mxu1  ;;  %v412_v10 = vadd.f32 %v411_v4, %v253_v31  ;;  %v444_v11 = vadd.f32 %v443_v5, %v293_v3 }
  0xfd   : > { %v414_v8 = vpop.f32.mrb[10].mxu0  ;;  %v446_v9 = vpop.f32.mrb[10].mxu1 }
  0xfe   : > { %v415_v12 = vadd.f32 %v414_v8, %v258_v30  ;;  %v447_v13 = vadd.f32 %v446_v9, %v298_v2  ;;  %v713_v14 = vpop.f32.mrb[11].mxu0  ;;  %v729_v15 = vpop.f32.mrb[11].mxu1 }
 0x100   : > { %v664_v16 = vpack.c.bf16 %v415_v12, %v412_v10  ;;  %v684_v17 = vpack.c.bf16 %v447_v13, %v444_v11 }
 0x102   : > { %687 = vst [vmem:[%s921_s19 + $0x10] sm:$0xff] %v664_v16   ;;  %691 = vst [vmem:[%s921_s19 + $0x30] sm:$0xff] %v684_v17  }
 0x103   : > { %v419_v18 = vpop.f32.mrb[12].mxu0 }
 0x104   : > { %v716_v19 = vpop.f32.mrb[13].mxu0  ;;  %v420_v21 = vadd.f32 %v419_v18, %v263_v33 }
 0x105   : > { %v422_v20 = vpop.f32.mrb[14].mxu0 }
 0x106   : > { %v423_v22 = vadd.f32 %v422_v20, %v268_v32  ;;  %v717_v23 = vpop.f32.mrb[15].mxu0 }
 0x108   : > { %v669_v24 = vpack.c.bf16 %v423_v22, %v420_v21 }
 0x10a   : > { %688 = vst [vmem:[%s921_s19 + $0x18] sm:$0xff] %v669_v24  }
 0x10b PF: > { %s13_s14 = sadd.s32 1, %s791_s14   ;;  %s943_s12 = smov %s787_s13 }
 0x10c   : > { %p10_p5 = scmp.ge.s32.totalorder %s13_s14, 4   ;;  %s944_s13 = smov %s946_s15 }
 0x10e   :  { %12 = sbr.rel (!%p10_p5) target bundleno = 2 (0x2), region = 62 }

</bundles_post_ra>
